<compile_context>
chip_gen: v6e
topology: v6e:2x2x1
jax: 0.10.0
libtpu: 0.0.40
codegen_flags: <defaults>
</compile_context>

<pallas_src>
import functools

import jax
import jax.numpy as jnp
from jax import lax
from jax.experimental import pallas as pl
from jax.experimental.pallas import tpu as pltpu

EPS = 1e-5
NUM_CORES = 2          # stats-pass partial accumulators (v7x megacore split)
VMEM_LIMIT = 32 * 1024 * 1024


# --------------------------------------------------------------------------
# Kernel 1: streamed per-channel stats (sum and 24x24 Gram).
# Grid = (NUM_CORES, tiles_per_core); axis 0 is "parallel" (v7x uses both
# TensorCores), axis 1 is "arbitrary" (resident accumulator per core).
# --------------------------------------------------------------------------
def _stats_kernel(x_ref, sum_ref, gram_ref, *, p_true, tile_p):
    c = pl.program_id(0)
    i = pl.program_id(1)
    half = pl.num_programs(1)
    gt = c * half + i                      # global P-tile index for this step

    @pl.when(i == 0)
    def _():
        sum_ref[...] = jnp.zeros_like(sum_ref)
        gram_ref[...] = jnp.zeros_like(gram_ref)

    x_full = x_ref[...].astype(jnp.float32)          # (C_in, tile_p)

    def accumulate(x):
        sum_ref[0] += jnp.sum(x, axis=1, keepdims=True)            # (C_in, 1)
        # Gram = x @ x^T (contract the lane/P dim of both operands on the MXU)
        gram_ref[0] += lax.dot_general(
            x, x, (((1,), (1,)), ((), ())),
            preferred_element_type=jnp.float32)                    # (C_in, C_in)

    # Full tiles take the unmasked fast path; only the last (partial) tile
    # and any phantom tile of the 2-core split pays for the iota/select mask.
    is_full = (gt + 1) * tile_p <= p_true

    @pl.when(is_full)
    def _():
        accumulate(x_full)

    @pl.when(jnp.logical_not(is_full))
    def _():
        col = lax.broadcasted_iota(jnp.int32, x_full.shape, 1) + gt * tile_p
        accumulate(jnp.where(col < p_true, x_full, 0.0))


# --------------------------------------------------------------------------
# Kernel 2: streamed apply. The BN fold is recomputed per tile from the tiny
# stats tensors (a few 144x24x24 MACs, <2% of the main matmul) so the whole
# op is two pallas_calls with no XLA fold in between.
# --------------------------------------------------------------------------
def _apply_kernel(sum_ref, gram_ref, w_ref, g1_ref, g2_ref, b2_ref,
                  x_ref, o_ref, *, inv_p):
    # Merge the per-core partial stats.
    s = sum_ref[0] + sum_ref[1]                       # (C_in, 1)
    g = gram_ref[0] + gram_ref[1]                     # (C_in, C_in)

    mean1 = s * inv_p                                 # (C_in, 1)
    gp = g * inv_p                                    # (C_in, C_in) = E[x x^T]

    c_in = gp.shape[0]
    row = lax.broadcasted_iota(jnp.int32, (c_in, c_in), 0)
    col = lax.broadcasted_iota(jnp.int32, (c_in, c_in), 1)
    eye = row == col

    # var1 = diag(Gram)/P - mean1^2  (clamped; E[x^2]-E[x]^2 can go ~-eps)
    diag_gp = jnp.sum(jnp.where(eye, gp, 0.0), axis=1, keepdims=True)
    var1 = jnp.maximum(diag_gp - mean1 * mean1, 0.0)
    a1 = g1_ref[...] * lax.rsqrt(var1 + EPS)          # (C_in, 1)

    # Fold a1 into the conv weight via a diagonal matmul (no transposes).
    d_a1 = jnp.where(eye, a1, 0.0)                    # diag(a1), (C_in, C_in)
    wa = jnp.dot(w_ref[...], d_a1,
                 preferred_element_type=jnp.float32)  # (C_out, C_in)

    u = jnp.dot(wa, mean1,
                preferred_element_type=jnp.float32)   # Wa @ mean1, (C_out, 1)
    wg = jnp.dot(wa, gp,
                 preferred_element_type=jnp.float32)  # (C_out, C_in)
    # var2 = diag(Wa Cov Wa^T) = rowsum((Wa Gp) * Wa) - (Wa mean1)^2
    var2 = jnp.maximum(
        jnp.sum(wg * wa, axis=1, keepdims=True) - u * u, 0.0)
    a2 = g2_ref[...] * lax.rsqrt(var2 + EPS)          # (C_out, 1)

    w_eff = wa * a2                                   # (C_out, C_in)
    bias = b2_ref[...] - a2 * u                       # (C_out, 1); beta1 cancels

    # Main matmul: (C_out, C_in) @ (C_in, tile_p) on the MXU.
    o_ref[...] = (
        jnp.dot(w_eff, x_ref[...].astype(jnp.float32),
                preferred_element_type=jnp.float32) + bias
    ).astype(o_ref.dtype)


# --------------------------------------------------------------------------
# Wrapper
# --------------------------------------------------------------------------
def bn_conv_bn(x_nchw, conv_w, gamma1, beta1, gamma2, beta2, *,
               tile_p_target=8192):
    """x_nchw: (N, 24, H, W); conv_w: (144, 24, 1, 1)."""
    n, c_in, h, w = x_nchw.shape
    c_out = conv_w.shape[0]
    p = n * h * w

    # NCHW -> (C_in, P).  For N == 1 this is a pure reshape (no HBM copy).
    if n == 1:
        x2d = x_nchw.reshape(c_in, p)
    else:
        # TODO(synk): for N > 1, grid over (N, P-tiles) instead of this
        # XLA transpose to avoid the extra HBM copies.
        x2d = jnp.transpose(x_nchw.reshape(n, c_in, h * w), (1, 0, 2))
        x2d = x2d.reshape(c_in, p)

    # P tile: lane-dense multiple of 128, as large as reasonable.
    # Apply-pass per-step VMEM ~ 2*(c_in+c_out)*4*tile_p bytes (double
    # buffered); tile_p_target=8192 -> ~11 MB, inside the explicit 32 MiB
    # scoped-VMEM limit on v5e/v6e/v7x.
    if p >= 128:
        tile_p = min(tile_p_target, max(128, (p // 128) * 128))
    else:
        tile_p = p  # single full block (block dim == array dim is allowed)
    grid_p = pl.cdiv(p, tile_p)
    half = pl.cdiv(grid_p, NUM_CORES)
    last_blk = grid_p - 1

    # ---------------- pass 1: stats ----------------
    # Phantom steps (c*half+i >= grid_p) get a clamped block index; their
    # contribution is zeroed by the in-kernel mask.
    x_stats_map = lambda c, i: (0, jnp.minimum(c * half + i, last_blk))

    sum_x, gram = pl.pallas_call(
        functools.partial(_stats_kernel, p_true=p, tile_p=tile_p),
        out_shape=(
            jax.ShapeDtypeStruct((NUM_CORES, c_in, 1), jnp.float32),
            jax.ShapeDtypeStruct((NUM_CORES, c_in, c_in), jnp.float32),
        ),
        grid=(NUM_CORES, half),
        in_specs=[pl.BlockSpec((c_in, tile_p), x_stats_map)],
        out_specs=(
            pl.BlockSpec((1, c_in, 1), lambda c, i: (c, 0, 0)),
            pl.BlockSpec((1, c_in, c_in), lambda c, i: (c, 0, 0)),
        ),
        compiler_params=pltpu.CompilerParams(
            dimension_semantics=("parallel", "arbitrary"),
            vmem_limit_bytes=VMEM_LIMIT),
        cost_estimate=pl.CostEstimate(
            flops=2 * p * c_in * c_in + p * c_in,
            transcendentals=0,
            bytes_accessed=4 * p * c_in),
    )(x2d)

    # Tiny resident operands for the apply pass.
    w2 = conv_w.reshape(c_out, c_in).astype(jnp.float32)
    g1c = gamma1.astype(jnp.float32).reshape(c_in, 1)
    g2c = gamma2.astype(jnp.float32).reshape(c_out, 1)
    b2c = beta2.astype(jnp.float32).reshape(c_out, 1)
    del beta1  # cancels exactly: BN2 removes any post-conv constant

    # ---------------- pass 2: fold + apply ----------------
    out2d = pl.pallas_call(
        functools.partial(_apply_kernel, inv_p=1.0 / p),
        out_shape=jax.ShapeDtypeStruct((c_out, p), jnp.float32),
        grid=(grid_p,),
        in_specs=[
            pl.BlockSpec((NUM_CORES, c_in, 1), lambda i: (0, 0, 0)),     # sum_x
            pl.BlockSpec((NUM_CORES, c_in, c_in), lambda i: (0, 0, 0)),  # gram
            pl.BlockSpec((c_out, c_in), lambda i: (0, 0)),               # W
            pl.BlockSpec((c_in, 1), lambda i: (0, 0)),                   # gamma1
            pl.BlockSpec((c_out, 1), lambda i: (0, 0)),                  # gamma2
            pl.BlockSpec((c_out, 1), lambda i: (0, 0)),                  # beta2
            pl.BlockSpec((c_in, tile_p), lambda i: (0, i)),              # x (streamed)
        ],
        out_specs=pl.BlockSpec((c_out, tile_p), lambda i: (0, i)),
        compiler_params=pltpu.CompilerParams(
            dimension_semantics=("parallel",),
            vmem_limit_bytes=VMEM_LIMIT),
        cost_estimate=pl.CostEstimate(
            flops=2 * p * c_in * c_out,
            transcendentals=0,
            bytes_accessed=4 * (p * c_in + p * c_out + c_in * c_out + c_out)),
    )(sum_x, gram, w2, g1c, g2c, b2c, x2d)

    # (C_out, P) -> NCHW (free reshape for N == 1).
    if n == 1:
        return out2d.reshape(1, c_out, h, w)
    return jnp.transpose(out2d.reshape(c_out, n, h, w), (1, 0, 2, 3))


# --------------------------------------------------------------------------
# Pure-JAX reference (PyTorch training-mode forward semantics).
# --------------------------------------------------------------------------
def _reference(x_nchw, conv_w, gamma1, beta1, gamma2, beta2):
    def bn(x, g, b):
        mean = jnp.mean(x, axis=(0, 2, 3), keepdims=True)
        var = jnp.mean((x - mean) ** 2, axis=(0, 2, 3), keepdims=True)
        return (x - mean) * lax.rsqrt(var + EPS) * g.reshape(1, -1, 1, 1) \
            + b.reshape(1, -1, 1, 1)

    x1 = bn(x_nchw, gamma1, beta1)
    y = lax.conv_general_dilated(
        x1, conv_w, window_strides=(1, 1), padding="VALID",
        dimension_numbers=("NCHW", "OIHW", "NCHW"))
    return bn(y, gamma2, beta2)


if __name__ == "__main__":
    # Small shapes consistent with the module: 24 -> 144 channels, batch 1,
    # spatial reduced from 56 to 24 (P = 576; non-multiple of 128 so the
    # partial-tile and phantom-tile paths are exercised).
    N, C_IN, C_OUT, H, W = 1, 24, 144, 24, 24

    key = jax.random.PRNGKey(0)
    kx, kw, kg1, kb1, kg2, kb2 = jax.random.split(key, 6)

    x = jax.random.normal(kx, (N, C_IN, H, W), dtype=jnp.float32)
    conv_w = jax.random.normal(kw, (C_OUT, C_IN, 1, 1), dtype=jnp.float32) * 0.1
    gamma1 = 1.0 + 0.1 * jax.random.normal(kg1, (C_IN,), dtype=jnp.float32)
    beta1 = 0.1 * jax.random.normal(kb1, (C_IN,), dtype=jnp.float32)
    gamma2 = 1.0 + 0.1 * jax.random.normal(kg2, (C_OUT,), dtype=jnp.float32)
    beta2 = 0.1 * jax.random.normal(kb2, (C_OUT,), dtype=jnp.float32)

    ref = _reference(x, conv_w, gamma1, beta1, gamma2, beta2)

    # Config 1: tiny tiles -> multi-tile accumulation, partial last tile and
    # a phantom tile on the second half of the stats grid.
    out = bn_conv_bn(x, conv_w, gamma1, beta1, gamma2, beta2,
                     tile_p_target=128)
    out = jax.block_until_ready(out)
    assert out.shape == (N, C_OUT, H, W)
    err = float(jnp.max(jnp.abs(out - ref)))
    assert jnp.allclose(out, ref, atol=2e-4, rtol=2e-4), err

    # Config 2: default (large) tiles.
    out2 = bn_conv_bn(x, conv_w, gamma1, beta1, gamma2, beta2)
    out2 = jax.block_until_ready(out2)
    err2 = float(jnp.max(jnp.abs(out2 - ref)))
    assert jnp.allclose(out2, ref, atol=2e-4, rtol=2e-4), err2

    print("KERNEL_OK")
</pallas_src>

<mosaic_0001>
module attributes {stable_mosaic.version = 11 : i64} {
  func.func @_stats_kernel(%arg0: i32, %arg1: i32, %arg2: memref<24x128xf32, #tpu.memory_space<vmem>>, %arg3: memref<1x24x1xf32, #tpu.memory_space<vmem>>, %arg4: memref<1x24x24xf32, #tpu.memory_space<vmem>>) attributes {dimension_semantics = [#tpu.dimension_semantics<parallel>, #tpu.dimension_semantics<arbitrary>], iteration_bounds = array<i64: 2, 3>, scalar_prefetch = 0 : i64, scratch_operands = 0 : i64, tpu.core_type = #tpu.core_type<tc>, window_params = [{transform_indices = @transform_0, window_bounds = array<i64: 24, 128>}, {transform_indices = @transform_1, window_bounds = array<i64: 1, 24, 1>}, {transform_indices = @transform_2, window_bounds = array<i64: 1, 24, 24>}]} {
    %c3_i32 = arith.constant 3 : i32
    %0 = arith.muli %arg0, %c3_i32 : i32
    %1 = arith.addi %0, %arg1 : i32
    %c0_i32 = arith.constant 0 : i32
    %2 = arith.cmpi eq, %arg1, %c0_i32 : i32
    %3 = arith.extui %2 : i1 to i32
    %c0_i32_0 = arith.constant 0 : i32
    %4 = arith.cmpi ne, %3, %c0_i32_0 : i32
    scf.if %4 {
      %cst = arith.constant 0.000000e+00 : f32
      %14 = vector.broadcast %cst : f32 to vector<1x24x1xf32>
      %c0_4 = arith.constant 0 : index
      %c0_5 = arith.constant 0 : index
      %c0_6 = arith.constant 0 : index
      %15 = vector.load %arg3[%c0_4, %c0_5, %c0_6] : memref<1x24x1xf32, #tpu.memory_space<vmem>>, vector<1x24x1xf32>
      tpu.vector_store %arg3[%c0_4, %c0_5, %c0_6], %14 {strides = array<i32>} : memref<1x24x1xf32, #tpu.memory_space<vmem>>, vector<1x24x1xf32>,
      %cst_7 = arith.constant 0.000000e+00 : f32
      %16 = vector.broadcast %cst_7 : f32 to vector<1x24x24xf32>
      %c0_8 = arith.constant 0 : index
      %c0_9 = arith.constant 0 : index
      %c0_10 = arith.constant 0 : index
      %17 = vector.load %arg4[%c0_8, %c0_9, %c0_10] : memref<1x24x24xf32, #tpu.memory_space<vmem>>, vector<1x24x24xf32>
      tpu.vector_store %arg4[%c0_8, %c0_9, %c0_10], %16 {strides = array<i32>} : memref<1x24x24xf32, #tpu.memory_space<vmem>>, vector<1x24x24xf32>,
    } else {
    }
    %c0 = arith.constant 0 : index
    %c0_1 = arith.constant 0 : index
    %5 = vector.load %arg2[%c0, %c0_1] : memref<24x128xf32, #tpu.memory_space<vmem>>, vector<24x128xf32>
    %c1_i32 = arith.constant 1 : i32
    %6 = arith.addi %1, %c1_i32 : i32
    %c128_i32 = arith.constant 128 : i32
    %7 = arith.muli %6, %c128_i32 : i32
    %c576_i32 = arith.constant 576 : i32
    %8 = arith.cmpi sle, %7, %c576_i32 : i32
    %9 = arith.extui %8 : i1 to i32
    %c0_i32_2 = arith.constant 0 : i32
    %10 = arith.cmpi ne, %9, %c0_i32_2 : i32
    scf.if %10 {
      %c0_4 = arith.constant 0 : index
      %c0_5 = arith.constant 0 : index
      %c0_6 = arith.constant 0 : index
      %14 = vector.load %arg3[%c0_4, %c0_5, %c0_6] : memref<1x24x1xf32, #tpu.memory_space<vmem>>, vector<1x24x1xf32>
      %15 = vector.shape_cast %14 : vector<1x24x1xf32> to vector<24x1xf32>
      %cst = arith.constant dense<0.000000e+00> : vector<24xf32>
      %16 = vector.multi_reduction <add>, %5, %cst [1] : vector<24x128xf32> to vector<24xf32>
      %17 = vector.shape_cast %16 : vector<24xf32> to vector<24x1xf32>
      %18 = arith.addf %15, %17 : vector<24x1xf32>
      %c0_7 = arith.constant 0 : index
      %c0_8 = arith.constant 0 : index
      %c0_9 = arith.constant 0 : index
      %19 = vector.load %arg3[%c0_7, %c0_8, %c0_9] : memref<1x24x1xf32, #tpu.memory_space<vmem>>, vector<1x24x1xf32>
      %20 = vector.shape_cast %19 : vector<1x24x1xf32> to vector<24x1xf32>
      %21 = vector.shape_cast %18 : vector<24x1xf32> to vector<1x24x1xf32>
      tpu.vector_store %arg3[%c0_7, %c0_8, %c0_9], %21 {strides = array<i32>} : memref<1x24x1xf32, #tpu.memory_space<vmem>>, vector<1x24x1xf32>,
      %c0_10 = arith.constant 0 : index
      %c0_11 = arith.constant 0 : index
      %c0_12 = arith.constant 0 : index
      %22 = vector.load %arg4[%c0_10, %c0_11, %c0_12] : memref<1x24x24xf32, #tpu.memory_space<vmem>>, vector<1x24x24xf32>
      %23 = vector.shape_cast %22 : vector<1x24x24xf32> to vector<24x24xf32>
      %cst_13 = arith.constant dense<0.000000e+00> : vector<24x24xf32>
      %24 = tpu.matmul %5, %5, %cst_13 {dimension_numbers = #tpu.dot_dimension_numbers<[1], [1], [0], [0], [0, 0, 1, 0], [], []>} : vector<24x128xf32>, vector<24x128xf32>, vector<24x24xf32> -> vector<24x24xf32>
      %25 = arith.addf %23, %24 : vector<24x24xf32>
      %c0_14 = arith.constant 0 : index
      %c0_15 = arith.constant 0 : index
      %c0_16 = arith.constant 0 : index
      %26 = vector.load %arg4[%c0_14, %c0_15, %c0_16] : memref<1x24x24xf32, #tpu.memory_space<vmem>>, vector<1x24x24xf32>
      %27 = vector.shape_cast %26 : vector<1x24x24xf32> to vector<24x24xf32>
      %28 = vector.shape_cast %25 : vector<24x24xf32> to vector<1x24x24xf32>
      tpu.vector_store %arg4[%c0_14, %c0_15, %c0_16], %28 {strides = array<i32>} : memref<1x24x24xf32, #tpu.memory_space<vmem>>, vector<1x24x24xf32>,
    } else {
    }
    %true = arith.constant true
    %11 = arith.xori %8, %true : i1
    %12 = arith.extui %11 : i1 to i32
    %c0_i32_3 = arith.constant 0 : i32
    %13 = arith.cmpi ne, %12, %c0_i32_3 : i32
    scf.if %13 {
      %14 = tpu.iota {dimensions = array<i32: 1>} : vector<24x128xi32>
      %c128_i32_4 = arith.constant 128 : i32
      %15 = arith.muli %1, %c128_i32_4 : i32
      %16 = vector.broadcast %15 : i32 to vector<24x128xi32>
      %17 = arith.addi %14, %16 : vector<24x128xi32>
      %c576_i32_5 = arith.constant 576 : i32
      %18 = vector.broadcast %c576_i32_5 : i32 to vector<24x128xi32>
      %19 = arith.cmpi slt, %17, %18 : vector<24x128xi32>
      %cst = arith.constant 0.000000e+00 : f32
      %20 = vector.broadcast %cst : f32 to vector<24x128xf32>
      %21 = arith.select %19, %5, %20 : vector<24x128xi1>, vector<24x128xf32>
      %c0_6 = arith.constant 0 : index
      %c0_7 = arith.constant 0 : index
      %c0_8 = arith.constant 0 : index
      %22 = vector.load %arg3[%c0_6, %c0_7, %c0_8] : memref<1x24x1xf32, #tpu.memory_space<vmem>>, vector<1x24x1xf32>
      %23 = vector.shape_cast %22 : vector<1x24x1xf32> to vector<24x1xf32>
      %cst_9 = arith.constant dense<0.000000e+00> : vector<24xf32>
      %24 = vector.multi_reduction <add>, %21, %cst_9 [1] : vector<24x128xf32> to vector<24xf32>
      %25 = vector.shape_cast %24 : vector<24xf32> to vector<24x1xf32>
      %26 = arith.addf %23, %25 : vector<24x1xf32>
      %c0_10 = arith.constant 0 : index
      %c0_11 = arith.constant 0 : index
      %c0_12 = arith.constant 0 : index
      %27 = vector.load %arg3[%c0_10, %c0_11, %c0_12] : memref<1x24x1xf32, #tpu.memory_space<vmem>>, vector<1x24x1xf32>
      %28 = vector.shape_cast %27 : vector<1x24x1xf32> to vector<24x1xf32>
      %29 = vector.shape_cast %26 : vector<24x1xf32> to vector<1x24x1xf32>
      tpu.vector_store %arg3[%c0_10, %c0_11, %c0_12], %29 {strides = array<i32>} : memref<1x24x1xf32, #tpu.memory_space<vmem>>, vector<1x24x1xf32>,
      %c0_13 = arith.constant 0 : index
      %c0_14 = arith.constant 0 : index
      %c0_15 = arith.constant 0 : index
      %30 = vector.load %arg4[%c0_13, %c0_14, %c0_15] : memref<1x24x24xf32, #tpu.memory_space<vmem>>, vector<1x24x24xf32>
      %31 = vector.shape_cast %30 : vector<1x24x24xf32> to vector<24x24xf32>
      %cst_16 = arith.constant dense<0.000000e+00> : vector<24x24xf32>
      %32 = tpu.matmul %21, %21, %cst_16 {dimension_numbers = #tpu.dot_dimension_numbers<[1], [1], [0], [0], [0, 0, 1, 0], [], []>} : vector<24x128xf32>, vector<24x128xf32>, vector<24x24xf32> -> vector<24x24xf32>
      %33 = arith.addf %31, %32 : vector<24x24xf32>
      %c0_17 = arith.constant 0 : index
      %c0_18 = arith.constant 0 : index
      %c0_19 = arith.constant 0 : index
      %34 = vector.load %arg4[%c0_17, %c0_18, %c0_19] : memref<1x24x24xf32, #tpu.memory_space<vmem>>, vector<1x24x24xf32>
      %35 = vector.shape_cast %34 : vector<1x24x24xf32> to vector<24x24xf32>
      %36 = vector.shape_cast %33 : vector<24x24xf32> to vector<1x24x24xf32>
      tpu.vector_store %arg4[%c0_17, %c0_18, %c0_19], %36 {strides = array<i32>} : memref<1x24x24xf32, #tpu.memory_space<vmem>>, vector<1x24x24xf32>,
    } else {
    }
    return
  }
  func.func @transform_0(%arg0: i32, %arg1: i32) -> (i32, i32) {
    %c3_i32 = arith.constant 3 : i32
    %0 = arith.muli %arg0, %c3_i32 : i32
    %1 = arith.addi %0, %arg1 : i32
    %c4_i32 = arith.constant 4 : i32
    %2 = arith.minsi %1, %c4_i32 : i32
    %c0_i32 = arith.constant 0 : i32
    %c0_i32_0 = arith.constant 0 : i32
    return %c0_i32, %2 : i32, i32
  }
  func.func @transform_1(%arg0: i32, %arg1: i32) -> (i32, i32, i32) {
    %c0_i32 = arith.constant 0 : i32
    %c0_i32_0 = arith.constant 0 : i32
    %c0_i32_1 = arith.constant 0 : i32
    return %arg0, %c0_i32, %c0_i32_0 : i32, i32, i32
  }
  func.func @transform_2(%arg0: i32, %arg1: i32) -> (i32, i32, i32) {
    %c0_i32 = arith.constant 0 : i32
    %c0_i32_0 = arith.constant 0 : i32
    %c0_i32_1 = arith.constant 0 : i32
    return %arg0, %c0_i32, %c0_i32_0 : i32, i32, i32
  }
}

</mosaic_0001>

<bundles_post_ra>
// kernel: tpu_custom_call.1
= control target key start
LH: loop header
LB: loop body
LE: loop exit
PB: predicated region body
PF: predicated region fallthrough
CT: control target
= control target key end

     0   :  { %8 = vsyncpa [#allocation3], 0  ;;  %s1255_s0 = inlined_call_operand.hbm [shape: f32[24,576], index: 0, kind: input, shape index: {}]   ;;  %s1256_s1 = inlined_call_operand.vmem [shape: f32[2,24,1], index: 1, kind: output, shape index: {0}]   ;;  %s1257_s2 = inlined_call_operand.hbm [shape: f32[2,24,24], index: 2, kind: output, shape index: {1}]  }
   0x1   :  { %10 = vsyncpa [#allocation3 + $0x1], 0 }
   0x2   :  { %11 = vsyncpa [#allocation4], 0 }
   0x3   :  { %13 = vsyncpa [#allocation4 + $0x1], 0  ;;  %s952_s9 = smov 0   ;;  %s954_s10 = smov 0  }
   0x4   :  { %s956_s11 = smov 0   ;;  %s958_s12 = smov 0  }
   0x5   :  { %s960_s13 = smov 0   ;;  %s962_s14 = smov 0  }
   0x6   :  { %s964_s15 = smov 0   ;;  %s966_s16 = smov 0  }
   0x7   :  { %s968_s17 = smov 0   ;;  %s970_s18 = smov 0  }
   0x8   :  { %s972_s19 = smov 0  }
   0x9 LB: > { %s581_s20 = sadd.s32 4294967295, %s923_s19   ;;  %s582_s21 = sadd.s32 4294967294, %s923_s19   ;;  %s923_s19 = sphi %s972_s19, %s19_s19   ;;  %s919_s18 = sphi %s970_s18, %s1278_s18   ;;  %s915_s17 = sphi %s968_s17, %s1277_s17   ;;  %s911_s16 = sphi %s966_s16, %s1276_s16   ;;  %s907_s15 = sphi %s964_s15, %s1275_s15   ;;  %s903_s14 = sphi %s962_s14, %s1274_s14   ;;  %s899_s13 = sphi %s960_s13, %s1273_s13   ;;  %s895_s12 = sphi %s958_s12, %s1272_s12   ;;  %s891_s11 = sphi %s956_s11, %s1271_s11   ;;  %s887_s10 = sphi %s954_s10, %s1270_s10   ;;  %s883_s9 = sphi %s952_s9, %s1269_s9  }
   0xa   : > { %s28_s22 = sadd.s32 1, %s915_s17  ;;  %s31_s23 = sadd.s32 1, %s919_s18 }
   0xb   : > { %p29_p0 = scmp.ge.s32.totalorder %s28_s22, 3  ;;  %s35_s24 = smul.u32 3, %s919_s18 }
   0xc   : > { %s46_s25 = sadd.s32 1, %s903_s14  ;;  %p53_p1 = scmp.ne.s32.totalorder %s903_s14, %s899_s13 }
   0xd   : > { %s1280_s22 = smov (%p29_p0, %s28_s22), 0  ;;  %s1282_s23 = smov (!%p29_p0, %s31_s23), %s919_s18 }
   0xe   : > { %1260 = sst [smem:[#allocation8_spill]] %s1280_s22  ;;  %s36_s26 = sadd.s32 %s915_s17, %s35_s24 }
   0xf   : > { %p54_p2 = scmp.eq.s32.totalorder %s923_s19, 0  ;;  %p33_p3 = scmp.ge.s32.totalorder %s1282_s23, 2 }
  0x10   : > { %p37_p4 = scmp.lt.s32.totalorder %s36_s26, 4  ;;  %p59_p6 = scmp.ne.s32.totalorder %s899_s13, %s895_s12 }
  0x11   : > { %p1020_p5 = por %p54_p2, %p53_p1  ;;  %s1284_s23 = smov (%p33_p3, %s1282_s23), 0 }
  0x12   : > { %1262 = sst [smem:[#allocation9_spill]] %s1284_s23  ;;  %s1286_s26 = smov (!%p37_p4, %s36_s26), 4 }
  0x13   : > { %s39_s28 = smul.u32 3, %s1284_s23  ;;  %p60_p7 = scmp.eq.s32.totalorder %s581_s20, 0 }
  0x14   : > { %s95_s29 = ssub.s32 %s919_s18, %s1284_s23  ;;  %s98_s30 = sadd.s32 1, %s891_s11 }
  0x15   : > { %s40_s3 = sadd.s32 %s39_s28, %s1280_s22  ;;  %p1033_p8 = por %p60_p7, %p59_p6 }
  0x16   : > { %p41_p9 = scmp.lt.s32.totalorder %s40_s3, 4  ;;  %p96_p10 = scmp.eq.s32.totalorder %s95_s29, 0 }
  0x17   : > { %p108_p11 = scmp.ne.s32.totalorder %s891_s11, %s887_s10  ;;  %p109_p12 = scmp.eq.s32.totalorder %s581_s20, 5 }
  0x18   : > { %s1288_s3 = smov (!%p41_p9, %s40_s3), 4  ;;  %p114_p1 = scmp.ne.s32.totalorder %s887_s10, %s883_s9 }
  0x19   : > { %s1040_s5 = scalar_select %p96_p10, %s891_s11, %s98_s30  }
  0x1a   : > { %s43_s6 = ssub.s32 %s1286_s26, %s1288_s3  ;;  %p1042_p13 = por %p109_p12, %p108_p11 }
  0x1b   : > { %p44_p0 = scmp.eq.s32.totalorder %s43_s6, 0  ;;  %p115_p2 = scmp.eq.s32.totalorder %s582_s21, 5 }
  0x1c   : > { %p675_p4 = scmp.lt.s32.totalorder %s923_s19, 6  ;;  %s135_s20 = sand.u32 1, %s903_s14  }
  0x1d   : > { %s1053_s8 = scalar_select %p44_p0, %s903_s14, %s46_s25  }
  0x1e   : > { %p1055_p3 = por %p115_p2, %p114_p1  ;;  %s585_s24 = sshll.u32 %s1286_s26, 7 }
  0x1f   : > { %s658_s28 = smul.u32 24, %s135_s20  ;;  %s148_s3 = scalar_lea.hbm %s1255_s0, %s585_s24 }
  0x20   : > { %p1066_p6 = pnand %p675_p4, %p1020_p5  ;;  %p586_p7 = scmp.ge.s32.totalorder %s923_s19, 1 }
  0x21   : > { %s139_s21 = scalar_lea.vmem [#allocation2], %s658_s28  ;;  %s136_s23 = scalar_lea.sflag [#allocation3], %s135_s20 }
  0x22   : > { %s149_s25 = sshll.u32 %s139_s21, 4  ;;  %p777_p9 = pneg %p1066_p6  ;;  %s150_s25 = int_to_ptr.vmem [resolvable:$true] %s149_s25 }
  0x23   : > { %s788_s22 = scalar_lea.vmem %s150_s25, 384  ;;  %s925_s26 = smov [#allocation2]  }
  0x24   : > { %p789_p10 = scmp.ne.s32.totalorder %s150_s25, %s788_s22  ;;  %s793_s29 = sshll.u32 %s925_s26, 4  ;;  %s794_s29 = int_to_ptr.vmem [resolvable:$false] %s793_s29 }
  0x25   : > { %s795_s27 = scalar_lea.vmem %s794_s29, 768  ;;  %p796_p5 = scmp.lt.s32.totalorder %s150_s25, %s794_s29 }
  0x26   : > { %p791_p11 = pnand %p789_p10, %p777_p9  ;;  %p797_p0 = scmp.lt.s32.totalorder %s795_s27, %s788_s22 }
  0x28   : > { %p792_p12 = pneg %p791_p11  ;;  %p798_p1 = por %p797_p0, %p796_p5 }
  0x2a   : > { %p799_p2 = pnand %p798_p1, %p792_p12 }
  0x2c   : > { %802 = shalt.err (!%p799_p2)
}
  0x2d   : > { %s926_s24 = smov 640   ;;  %s927_s20 = smov 128  }
  0x2e   : > { %s928_s28 = smov 8   ;;  %p157_p4 = scmp.lt.s32.totalorder %s923_s19, 7 }
  0x2f   : > { %670 = dma.hbm_to_vmem [thread:$0]  (!%p1066_p6), %s148_s3, 384, %s150_s25, %s136_s23, %s926_s24, %s927_s20, %s928_s28  }
  0x30   : > { %p158_p9 = pnand %p586_p7, %p157_p4 }
  0x31   : > { %s163_s30 = sand.u32 (!%p158_p9), 1, %s899_s13  }
  0x32   : > { %161 = sbr.rel (%p158_p9) target bundleno = 543 (0x21f), region = 24  ;;  %s164_s22 = scalar_lea.sflag (!%p158_p9), [#allocation3], %s163_s30 }
  0x33   : > { %s659_s21 = smul.u32 (!%p158_p9), 24, %s163_s30 }
  0x35   : > { %s167_s26 = scalar_lea.vmem (!%p158_p9), [#allocation2], %s659_s21 }
  0x37   : > { %874 = dma.done.wait (%p1033_p8), %s164_s22, 384  }
  0x38   : > { %876 = vsyncadd (%p1033_p8), %s164_s22, 4294966912  ;;  %s190_s23 = sand.u32 1, %s887_s10   ;;  %p197_p6 = scmp.lt.s32.totalorder %s911_s16, 1 }
  0x39   : > { %s660_s3 = smul.u32 24, %s190_s23  ;;  %p588_p8 = scmp.ne.s32.totalorder %s907_s15, 0 }
  0x3a   : > { %s198_s6 = scalar_select %p197_p6, %s911_s16, 1 }
  0x3b   : > { %s202_s25 = smul.u32 3, %s911_s16  ;;  %s1097_s28 = scalar_lea.vmem [#allocation5], %s660_s3 }
  0x3c   : > { %s661_s29 = smul.u32 24, %s198_s6 }
  0x3d   : > { %s1090_s27 = sadd.s32 %s907_s15, %s202_s25  ;;  %207 = sbr.rel (%p588_p8) target bundleno = 71 (0x47), region = 32 }
  0x3e   : > { %s1095_s4 = scalar_lea.vmem %s1256_s1, %s661_s29 }
  0x42   : > { %vm208_vm0 = vcmask 7168   ;;  %vm212_vm1 = vcmask 195584   ;;  %v929_v0 = vmov 0.0  }
  0x43   : > { %209 = vst.msk [vmem:[%s1095_s4] sm:$0xff] %vm208_vm0, %v929_v0  ;;  %210 = vst.msk [vmem:[%s1095_s4 + $0x8] sm:$0xff] %vm208_vm0, %v929_v0 }
  0x44   : > { %211 = vst.msk [vmem:[%s1095_s4 + $0x10] sm:$0xff] %vm208_vm0, %v929_v0 }
  0x45   : > { %213 = vst.msk [vmem:[%s1097_s28] sm:$0xff] %vm212_vm1, %v929_v0  ;;  %214 = vst.msk [vmem:[%s1097_s28 + $0x8] sm:$0xff] %vm212_vm1, %v929_v0 }
  0x46   : > { %215 = vst.msk [vmem:[%s1097_s28 + $0x10] sm:$0xff] %vm212_vm1, %v929_v0 }
  0x47 PF: > { %v1106_v1 = vld [vmem:[%s167_s26] sm:$0xff]  ;;  %v1108_v2 = vld [vmem:[%s167_s26 + $0x8] sm:$0xff]  ;;  %v1110_v3 = vld [vmem:[%s167_s26 + $0x10] sm:$0xff]  ;;  %s602_s15 = sshll.u32 %s1090_s27, 7 }
  0x48   : > { %s1115_s30 = sadd.s32 128, %s602_s15 }
  0x49   : > { %p590_p7 = scmp.gt.s32.totalorder %s1115_s30, 576 }
  0x4b   : > { %224 = sbr.rel (%p590_p7) target bundleno = 293 (0x125), region = 36 }
  0x50   : > { %228 = vadd.xlane.f32.xlu0 %v1106_v1  ;;  %232 = vadd.xlane.f32.xlu1 %v1110_v3  ;;  %v930_v4 = vmov 0.0   ;;  %vm931_vm2 = vmmov 0   ;;  %v225_v5 = vld [vmem:[%s1095_s4] sm:$0xff]  ;;  %v227_v6 = vld [vmem:[%s1095_s4 + $0x10] sm:$0xff]  ;;  %vm237_vm3 = vcmask 7168   ;;  %v226_v11 = vld [vmem:[%s1095_s4 + $0x8] sm:$0xff] }
  0x51   : > { %646 = vmatprep.subr.mxu1 %v930_v4  ;;  %616 = vmatprep.subr.mxu0 %v930_v4  ;;  %v242_v14 = vld [vmem:[%s1097_s28 + $0x8] sm:$0xff]  ;;  %v241_v15 = vld [vmem:[%s1097_s28] sm:$0xff]  ;;  %vm327_vm4 = vcmask 195584   ;;  %v243_v22 = vld [vmem:[%s1097_s28 + $0x10] sm:$0xff] }
  0x52   : > { %649 = vmatpush3.xpose.msra.mxu1 %v1110_v3  ;;  %617 = vmatpush3.xpose.msra.mxu0 %v1110_v3 }
  0x53   : > { %647 = vmatprep.subr.mxu1 %v930_v4  ;;  %618 = vmatprep.subr.mxu0 %v930_v4 }
  0x54   : > { %625 = vmatprep.mubr.msk.f32.mxu1 %vm931_vm2, %v930_v4  ;;  %622 = vmatprep.mubr.msk.f32.mxu0 %vm931_vm2, %v930_v4 }
  0x55   : > { %230 = vadd.xlane.f32.xlu0 %v1108_v2 }
  0x56   : > { %650 = vmatpush3.xpose.msra.mxu1 %v1108_v2  ;;  %619 = vmatpush3.xpose.msra.mxu0 %v1108_v2 }
  0x57   : > { %648 = vmatprep.subr.mxu1 %v930_v4  ;;  %620 = vmatprep.subr.mxu0 %v930_v4 }
  0x5a   : > { %651 = vmatpush3.xpose.msra.mxu1 %v1106_v1  ;;  %621 = vmatpush3.xpose.msra.mxu0 %v1106_v1 }
  0x5d   : > { %626 = vmatmul.mubr.f32.vlgmr.msra.gmra.mxu1 %v1108_v2  ;;  %623 = vmatmul.mubr.f32.vlgmr.msra.gmra.mxu0 %v1106_v1 }
  0x5e   : > { %628 = vmatprep.mubr.msk.f32.mxu1 %vm931_vm2, %v930_v4 }
  0x61   : > { %629 = vmatmul.mubr.f32.gmra.mxu1 %v1110_v3 }
  0xd9   : > { %v229_v7 = vpop.xlane.xlu0 %228  ;;  %v233_v8 = vpop.xlane.xlu1 %232 }
  0xda   : > { %v234_v9 = vadd.f32 %v229_v7, %v225_v5  ;;  %v236_v10 = vadd.f32 %v233_v8, %v227_v6 }
  0xdc   : > { %238 = vst.msk [vmem:[%s1095_s4] sm:$0xff] %vm237_vm3, %v234_v9  ;;  %240 = vst.msk [vmem:[%s1095_s4 + $0x10] sm:$0xff] %vm237_vm3, %v236_v10 }
  0xde   : > { %v231_v12 = vpop.xlane.xlu0 %230 }
  0xdf   : > { %v235_v13 = vadd.f32 %v231_v12, %v226_v11 }
  0xe1   : > { %239 = vst.msk [vmem:[%s1095_s4 + $0x8] sm:$0xff] %vm237_vm3, %v235_v13 }
 0x11d   : > { %v315_v16 = vpop.f32.mrf.mxu1  ;;  %v310_v17 = vpop.f32.mrf.mxu0 }
 0x11e   : > { %v325_v18 = vadd.f32 %v315_v16, %v242_v14  ;;  %v324_v19 = vadd.f32 %v310_v17, %v241_v15 }
 0x11f   : > { %v627_v20 = vpop.f32.mrf.mxu1  ;;  %v624_v21 = vpop.f32.mrf.mxu0 }
 0x120   : > { %329 = vst.msk [vmem:[%s1097_s28 + $0x8] sm:$0xff] %vm327_vm4, %v325_v18  ;;  %328 = vst.msk [vmem:[%s1097_s28] sm:$0xff] %vm327_vm4, %v324_v19 }
 0x121   : > { %v320_v23 = vpop.f32.mrf.mxu1 }
 0x122   : > { %v326_v24 = vadd.f32 %v320_v23, %v243_v22 }
 0x123   : > { %v630_v25 = vpop.f32.mrf.mxu1 }
 0x124   : > { %330 = vst.msk [vmem:[%s1097_s28 + $0x10] sm:$0xff] %vm327_vm4, %v326_v24 }
 0x125 PF: > { %p591_p10 = scmp.le.s32.totalorder %s1115_s30, 576 }
 0x127   : > { %334 = sbr.rel (%p591_p10) target bundleno = 518 (0x206), region = 40 }
 0x12c   : > { %v335_v26 = vlaneseq  ;;  %v932_v27 = vmov 0.0   ;;  %v338_v28 = vstv %s602_s15  ;;  %vm933_vm5 = vmmov 0   ;;  %v344_v34 = vld [vmem:[%s1095_s4] sm:$0xff]  ;;  %v346_v35 = vld [vmem:[%s1095_s4 + $0x10] sm:$0xff]  ;;  %v345_v40 = vld [vmem:[%s1095_s4 + $0x8] sm:$0xff] }
 0x12d   : > { %652 = vmatprep.subr.mxu1 %v932_v27  ;;  %631 = vmatprep.subr.mxu0 %v932_v27  ;;  %vm356_vm7 = vcmask 7168   ;;  %v361_v43 = vld [vmem:[%s1097_s28 + $0x8] sm:$0xff]  ;;  %v360_v44 = vld [vmem:[%s1097_s28] sm:$0xff]  ;;  %vm446_vm8 = vcmask 195584   ;;  %v362_v51 = vld [vmem:[%s1097_s28 + $0x10] sm:$0xff] }
 0x12e   : > { %v336_v29 = vand.u32 127, %v335_v26  ;;  %640 = vmatprep.mubr.msk.f32.mxu1 %vm933_vm5, %v932_v27  ;;  %637 = vmatprep.mubr.msk.f32.mxu0 %vm933_vm5, %v932_v27 }
 0x130   : > { %v339_v30 = vadd.s32 %v338_v28, %v336_v29 }
 0x132   : > { %vm340_vm6 = vcmp.lt.s32.totalorder %v339_v30, 576 }
 0x133   : > { %655 = vmatpush3.xpose.msk.msra.mxu1 %vm340_vm6, %v1110_v3  ;;  %632 = vmatpush3.xpose.msk.msra.mxu0 %vm340_vm6, %v1110_v3  ;;  %v341_v31 = vsel %vm340_vm6, %v1106_v1, 0.0  ;;  %v343_v32 = vsel %vm340_vm6, %v1110_v3, 0.0  ;;  %v342_v33 = vsel %vm340_vm6, %v1108_v2, 0.0 }
 0x134   : > { %653 = vmatprep.subr.mxu1 %v932_v27  ;;  %633 = vmatprep.subr.mxu0 %v932_v27 }
 0x135   : > { %347 = vadd.xlane.f32.xlu0 %v341_v31  ;;  %351 = vadd.xlane.f32.xlu1 %v343_v32 }
 0x137   : > { %656 = vmatpush3.xpose.msk.msra.mxu1 %vm340_vm6, %v1108_v2  ;;  %634 = vmatpush3.xpose.msk.msra.mxu0 %vm340_vm6, %v1108_v2 }
 0x138   : > { %654 = vmatprep.subr.mxu1 %v932_v27  ;;  %635 = vmatprep.subr.mxu0 %v932_v27 }
 0x139   : > { %349 = vadd.xlane.f32.xlu0 %v342_v33 }
 0x13b   : > { %657 = vmatpush3.xpose.msk.msra.mxu1 %vm340_vm6, %v1106_v1  ;;  %636 = vmatpush3.xpose.msk.msra.mxu0 %vm340_vm6, %v1106_v1 }
 0x13e   : > { %641 = vmatmul.mubr.msk.f32.vlgmr.msra.gmra.mxu1 %vm340_vm6, %v1108_v2  ;;  %638 = vmatmul.mubr.msk.f32.vlgmr.msra.gmra.mxu0 %vm340_vm6, %v1106_v1 }
 0x13f   : > { %643 = vmatprep.mubr.msk.f32.mxu1 %vm933_vm5, %v932_v27 }
 0x142   : > { %644 = vmatmul.mubr.msk.f32.gmra.mxu1 %vm340_vm6, %v1110_v3 }
 0x1be   : > { %v348_v36 = vpop.xlane.xlu0 %347  ;;  %v352_v37 = vpop.xlane.xlu1 %351 }
 0x1bf   : > { %v353_v38 = vadd.f32 %v348_v36, %v344_v34  ;;  %v355_v39 = vadd.f32 %v352_v37, %v346_v35 }
 0x1c1   : > { %357 = vst.msk [vmem:[%s1095_s4] sm:$0xff] %vm356_vm7, %v353_v38  ;;  %359 = vst.msk [vmem:[%s1095_s4 + $0x10] sm:$0xff] %vm356_vm7, %v355_v39 }
 0x1c2   : > { %v350_v41 = vpop.xlane.xlu0 %349 }
 0x1c3   : > { %v354_v42 = vadd.f32 %v350_v41, %v345_v40 }
 0x1c5   : > { %358 = vst.msk [vmem:[%s1095_s4 + $0x8] sm:$0xff] %vm356_vm7, %v354_v42 }
 0x1fe   : > { %v434_v45 = vpop.f32.mrf.mxu1  ;;  %v429_v46 = vpop.f32.mrf.mxu0 }
 0x1ff   : > { %v444_v47 = vadd.f32 %v434_v45, %v361_v43  ;;  %v443_v48 = vadd.f32 %v429_v46, %v360_v44 }
 0x200   : > { %v642_v49 = vpop.f32.mrf.mxu1  ;;  %v639_v50 = vpop.f32.mrf.mxu0 }
 0x201   : > { %448 = vst.msk [vmem:[%s1097_s28 + $0x8] sm:$0xff] %vm446_vm8, %v444_v47  ;;  %447 = vst.msk [vmem:[%s1097_s28] sm:$0xff] %vm446_vm8, %v443_v48 }
 0x202   : > { %v439_v52 = vpop.f32.mrf.mxu1 }
 0x203   : > { %v445_v53 = vadd.f32 %v439_v52, %v362_v51 }
 0x204   : > { %v645_v54 = vpop.f32.mrf.mxu1 }
 0x205   : > { %449 = vst.msk [vmem:[%s1097_s28 + $0x10] sm:$0xff] %vm446_vm8, %v445_v53 }
 0x206 PF: > { %s662_s21 = smul.u32 384, %s911_s16  ;;  %s472_s22 = sshll.u32 %s1097_s28, 4  ;;  %s1191_s22 = int_to_ptr.vmem [resolvable:$true] %s472_s22 }
 0x207   : > { %s1195_s25 = scalar_lea.sflag [#allocation4], %s190_s23  ;;  %s803_s29 = scalar_lea.vmem %s1191_s22, 384 }
 0x208   : > { %s1189_s6 = scalar_lea.hbm %s1257_s2, %s662_s21  ;;  %p804_p11 = scmp.ne.s32.totalorder %s1191_s22, %s803_s29 }
 0x209   : > { %s934_s16 = smov [#allocation5]  }
 0x20a   : > { %p805_p12 = pnand %p804_p11, %p1042_p13  ;;  %s807_s27 = sshll.u32 %s934_s16, 4  ;;  %s808_s27 = int_to_ptr.vmem [resolvable:$false] %s807_s27 }
 0x20b   : > { %s809_s24 = scalar_lea.vmem %s808_s27, 768  ;;  %p810_p0 = scmp.lt.s32.totalorder %s1191_s22, %s808_s27 }
 0x20c   : > { %p806_p5 = pneg %p805_p12  ;;  %p811_p1 = scmp.lt.s32.totalorder %s809_s24, %s803_s29 }
 0x20e   : > { %p812_p2 = por %p811_p1, %p810_p0 }
 0x210   : > { %p813_p4 = pnand %p812_p2, %p806_p5 }
 0x212   : > { %816 = shalt.err (!%p813_p4)
}
 0x213   : > { %s817_s23 = scalar_lea.hbm %s1189_s6, 384  ;;  %s821_s28 = scalar_lea.hbm %s1257_s2, 768 }
 0x214   : > { %p818_p9 = scmp.ne.s32.totalorder %s1189_s6, %s817_s23  ;;  %p822_p7 = scmp.lt.s32.totalorder %s1189_s6, %s1257_s2 }
 0x215   : > { %p823_p10 = scmp.lt.s32.totalorder %s821_s28, %s817_s23 }
 0x216   : > { %p819_p6 = pnand %p818_p9, %p1042_p13 }
 0x217   : > { %p824_p11 = por %p823_p10, %p822_p7 }
 0x218   : > { %p820_p8 = pneg %p819_p6 }
 0x21a   : > { %p825_p12 = pnand %p824_p11, %p820_p8 }
 0x21c   : > { %828 = shalt.err (!%p825_p12)
}
 0x21d   : > { %s935_s21 = smov 128   ;;  %s936_s26 = smov 8  }
 0x21e   : > { %665 = dma.vmem_to_hbm [thread:$0]  (%p1042_p13), %s1191_s22, 384, %s1189_s6, %s1195_s25, %s935_s21, %s935_s21, %s936_s26  }
 0x21f PF: > { %p676_p5 = scmp.ge.s32.totalorder %s923_s19, 2  ;;  %s495_s3 = sand.u32 1, %s883_s9  }
 0x220   : > { %s496_s29 = scalar_lea.sflag [#allocation4], %s495_s3 }
 0x221   : > { %p672_p0 = pnand %p676_p5, %p1055_p3 }
 0x223   : > { %p673_p1 = pneg %p672_p0 }
 0x225   : > { %878 = dma.done.wait (%p673_p1), %s496_s29, 384  }
 0x226   : > { %880 = vsyncadd (%p673_p1), %s496_s29, 4294966912  ;;  %s19_s19 = sadd.s32 1, %s923_s19   ;;  %s1267_s7 = sld [smem:[#allocation8_spill]] }
 0x227   : > { %p16_p2 = scmp.ge.s32.totalorder %s19_s19, 8   ;;  %s1268_s22 = sld [smem:[#allocation9_spill]] }
 0x228   : > { %s1269_s9 = smov %s887_s10  ;;  %s1270_s10 = smov %s891_s11 }
 0x229   : > { %s1271_s11 = smov %s1040_s5  ;;  %s1272_s12 = smov %s899_s13 }
 0x22a   : > { %s1273_s13 = smov %s903_s14  ;;  %s1274_s14 = smov %s1053_s8 }
 0x22b   : > { %s1275_s15 = smov %s915_s17  ;;  %s1276_s16 = smov %s919_s18 }
 0x22c   : > { %s1277_s17 = smov %s1267_s7  ;;  %18 = sbr.rel (!%p16_p2) target bundleno = 9 (0x9), region = 93 }
 0x22d   : > { %s1278_s18 = smov %s1268_s22 }
 0x231   :  { %501 = vsyncpa [#allocation3], 1 }
 0x232   :  { %503 = vsyncpa [#allocation3 + $0x1], 1 }
 0x233   :  { %504 = vsyncpa [#allocation4], 1 }
 0x234   :  { %506 = vsyncpa [#allocation4 + $0x1], 1 }

</bundles_post_ra>
